<compile_context>
chip_gen: v5e
topology: v5e:2x2
jax: 0.10.0
libtpu: 0.0.40
codegen_flags: <defaults>
</compile_context>

<pallas_src>
import functools

import jax
import jax.numpy as jnp
import numpy as np
from jax.experimental import pallas as pl
from jax.experimental.pallas import tpu as pltpu

STUDENT_TEMP = 0.1
TEACHER_TEMP = 0.04
INV_STUDENT_TEMP = 1.0 / STUDENT_TEMP
INV_TEACHER_TEMP = 1.0 / TEACHER_TEMP

# Large-negative pad value for lane-padding the feature dim: exp() underflows
# to exactly 0 so padded lanes get zero probability and contribute nothing to
# the lse / dot terms (finite, so 0 * pad never produces NaN).
_PAD_NEG = -1e30


def _round_up(x, m):
    return (x + m - 1) // m * m


def _pick_row_block(batch, cap=256):
    """Largest multiple of 8 that divides `batch` and is <= cap."""
    best, bt = 8, 8
    while bt <= min(batch, cap):
        if batch % bt == 0:
            best = bt
        bt += 8
    return best


def _multi_crop_loss_kernel(s_ref, t_ref, o_ref, tprob_ref, acc_ref, *, scale):
    # grid = (row_blocks, num_crops); axis 0 parallel, axis 1 sequential.
    i_idx = pl.program_id(1)                  # student-crop index (innermost)
    n_crops = pl.num_programs(1)

    # --- Per-row-block prologue (first crop step): build the bf16 teacher
    #     softmax cache for both teacher crops and clear the accumulator.
    @pl.when(i_idx == 0)
    def _():
        t = t_ref[...].astype(jnp.float32) * INV_TEACHER_TEMP      # (2,Bt,Dp)
        t_max = jnp.max(t, axis=-1, keepdims=True)
        t_exp = jnp.exp(t - t_max)
        inv_z = 1.0 / jnp.sum(t_exp, axis=-1, keepdims=True)
        tprob_ref[...] = (t_exp * inv_z).astype(tprob_ref.dtype)
        acc_ref[...] = jnp.zeros_like(acc_ref)

    # --- Student log-softmax pieces for this crop (shared by both teachers).
    s = s_ref[...].astype(jnp.float32) * INV_STUDENT_TEMP          # (Bt,Dp)
    s_shift = s - jnp.max(s, axis=-1, keepdims=True)
    s_lse = jnp.log(jnp.sum(jnp.exp(s_shift), axis=-1, keepdims=True))  # (Bt,1)

    # Both teacher dot terms in one vectorized pass over the cached softmax:
    #   ce(s_i, t_o) per row = lse(s) - sum_d tprob_o * s_shift
    tp = tprob_ref[...].astype(jnp.float32)                        # (2,Bt,Dp)
    dots = jnp.sum(tp * s_shift[None, :, :], axis=-1, keepdims=True)  # (2,Bt,1)

    # Diagonal (i == o) skip as 0/1 weights -> straight-line accumulation,
    # no per-step scf.if bodies or scalar read-modify-write stores.
    w0 = jnp.where(i_idx != 0, 1.0, 0.0)
    w1 = jnp.where(i_idx != 1, 1.0, 0.0)
    acc_ref[...] += (w0 + w1) * s_lse - (w0 * dots[0] + w1 * dots[1])

    # --- Per-row-block epilogue: one reduce, one lane-dense block store.
    @pl.when(i_idx == n_crops - 1)
    def _():
        o_ref[...] = jnp.zeros_like(o_ref) + jnp.sum(acc_ref[...]) * scale


def multi_crop_loss(student_preds, teacher_preds, num_crops, *, row_block=None):
    """Pallas implementation of MultiCropLossWrapper.forward (DINO CE loss)."""
    total_s, D = student_preds.shape
    total_t, Dt = teacher_preds.shape
    if num_crops < 2:
        raise ValueError("num_crops must be >= 2")
    if total_s % num_crops != 0 or total_t % 2 != 0 or D != Dt:
        raise ValueError("bad prediction shapes")
    B = total_s // num_crops
    # _check_batch_size equivalent.
    if total_t // 2 != B:
        raise ValueError(
            "[Error] The batch size of each prediction should be the same!")
    if B % 8 != 0:
        # TODO(synk): pad/mask the batch axis for non-multiple-of-8 crop sizes.
        raise ValueError("per-crop batch size must be a multiple of 8")

    if row_block is None:
        row_block = _pick_row_block(B)   # TODO(synk): tune per TPU generation
    if row_block % 8 != 0 or B % row_block != 0:
        raise ValueError("row_block must be a multiple of 8 dividing B")
    Bt = row_block
    n_row_blocks = B // Bt

    # Lane-pad the feature dim to a multiple of 128 (padded lanes -> prob 0).
    Dp = _round_up(D, 128)
    if Dp != D:
        pad = ((0, 0), (0, Dp - D))
        student_preds = jnp.pad(student_preds, pad, constant_values=_PAD_NEG)
        teacher_preds = jnp.pad(teacher_preds, pad, constant_values=_PAD_NEG)

    s3 = student_preds.reshape(num_crops, B, Dp)   # matches torch.chunk order
    t3 = teacher_preds.reshape(2, B, Dp)

    # loss = (1/(2*(num_crops-1)*B)) * sum over rows and (i != o) pairs of ce.
    scale = 1.0 / (2.0 * (num_crops - 1) * B)
    kernel = functools.partial(_multi_crop_loss_kernel, scale=scale)

    # Scoped-VMEM budget sized to the chosen tiles (with headroom).
    in_bytes = student_preds.dtype.itemsize
    tile_bytes = (2 * Bt * Dp * in_bytes      # student block, double-buffered
                  + 2 * Bt * Dp * in_bytes    # teacher block, single-buffered
                  + 2 * Bt * Dp * 2           # bf16 teacher-softmax cache
                  + Bt * 128 * 4              # (Bt,1) accumulator (lane-padded)
                  + 2 * 8 * 128 * 4)          # output blocks
    vmem_limit = int(min(max(4 * tile_bytes + (2 << 20), 16 << 20), 96 << 20))

    out = pl.pallas_call(
        kernel,
        # One lane-dense (8,128) block per row block; only [r,0,0] is used.
        out_shape=jax.ShapeDtypeStruct((n_row_blocks, 8, 128), jnp.float32),
        grid_spec=pltpu.PrefetchScalarGridSpec(
            num_scalar_prefetch=0,
            grid=(n_row_blocks, num_crops),
            in_specs=[
                # student crop i, row block r -> (Bt, Dp); read once each.
                pl.BlockSpec((None, Bt, Dp), lambda r, i: (i, r, 0)),
                # teacher rows for block r (both crops); index changes only
                # with r, single-buffered to avoid a wasted pipeline buffer.
                pl.BlockSpec((2, Bt, Dp), lambda r, i: (0, r, 0),
                             pipeline_mode=pl.Buffered(1)),
            ],
            out_specs=pl.BlockSpec((None, 8, 128), lambda r, i: (r, 0, 0)),
            scratch_shapes=[
                pltpu.VMEM((2, Bt, Dp), jnp.bfloat16),  # teacher softmax cache
                pltpu.VMEM((Bt, 1), jnp.float32),       # per-row accumulator
            ],
        ),
        compiler_params=pltpu.CompilerParams(
            dimension_semantics=("parallel", "arbitrary"),
            vmem_limit_bytes=vmem_limit),
    )(s3, t3)

    # Sum the per-row-block partial losses.
    return jnp.sum(out[:, 0, 0])


def _reference_loss(student_preds, teacher_preds, num_crops):
    """Pure-JAX reference mirroring the PyTorch forward loop (f32 math)."""
    sp = student_preds.astype(jnp.float32)
    tp = teacher_preds.astype(jnp.float32)
    teacher_list = jnp.split(tp, 2, axis=0)
    student_list = jnp.split(sp, num_crops, axis=0)

    def ce(s, t):
        t_prob = jax.nn.softmax(t / TEACHER_TEMP, axis=-1)
        s_logp = jax.nn.log_softmax(s / STUDENT_TEMP, axis=-1)
        return jnp.mean(-jnp.sum(t_prob * s_logp, axis=-1))

    loss = 0.0
    for o_idx in range(2):
        sub_loss = 0.0
        for i_idx in range(num_crops):
            if o_idx == i_idx:
                continue
            sub_loss += ce(student_list[i_idx], teacher_list[o_idx])
        loss += sub_loss / (num_crops - 1)
    return loss / 2.0


if __name__ == "__main__":
    num_crops = 4
    B = 16       # per-crop batch size (2 row blocks of 8 -> exercises tiling)
    D = 32       # feature dim (exercises lane padding to 128)

    key = jax.random.PRNGKey(0)
    ks, kt = jax.random.split(key)
    # bf16 inputs per perf review (kernel upcasts to f32 internally).
    student_preds = jax.random.normal(
        ks, (num_crops * B, D), dtype=jnp.float32).astype(jnp.bfloat16)
    teacher_preds = jax.random.normal(
        kt, (2 * B, D), dtype=jnp.float32).astype(jnp.bfloat16)

    loss = multi_crop_loss(student_preds, teacher_preds, num_crops, row_block=8)
    loss = jax.block_until_ready(loss)

    ref = _reference_loss(student_preds, teacher_preds, num_crops)
    # Tolerance loosened vs. the f32 reference because the in-kernel teacher
    # softmax cache is bf16 (~1e-3 relative, per review); still a tight check.
    np.testing.assert_allclose(np.asarray(loss), np.asarray(ref),
                               rtol=1e-2, atol=1e-2)
    print("KERNEL_OK")
</pallas_src>

<mosaic_0001>
module attributes {stable_mosaic.version = 11 : i64} {
  func.func @_multi_crop_loss_kernel(%arg0: i32, %arg1: i32, %arg2: memref<1x8x128xbf16, #tpu.memory_space<vmem>>, %arg3: memref<2x8x128xbf16, #tpu.memory_space<vmem>>, %arg4: memref<1x8x128xf32, #tpu.memory_space<vmem>>, %arg5: memref<2x8x128xbf16, #tpu.memory_space<vmem>>, %arg6: memref<8x1xf32, #tpu.memory_space<vmem>>) attributes {dimension_semantics = [#tpu.dimension_semantics<parallel>, #tpu.dimension_semantics<arbitrary>], iteration_bounds = array<i64: 2, 4>, scalar_prefetch = 0 : i64, scratch_operands = 2 : i64, tpu.core_type = #tpu.core_type<tc>, window_params = [{transform_indices = @transform_0, window_bounds = array<i64: 1, 8, 128>}, {pipeline_mode = #tpu.pipeline_mode<synchronous>, transform_indices = @transform_1, window_bounds = array<i64: 2, 8, 128>}, {transform_indices = @transform_2, window_bounds = array<i64: 1, 8, 128>}]} {
    %c0_i32 = arith.constant 0 : i32
    %0 = arith.cmpi eq, %arg1, %c0_i32 : i32
    %1 = arith.extui %0 : i1 to i32
    %c0_i32_0 = arith.constant 0 : i32
    %2 = arith.cmpi ne, %1, %c0_i32_0 : i32
    scf.if %2 {
      %c0_19 = arith.constant 0 : index
      %c0_20 = arith.constant 0 : index
      %c0_21 = arith.constant 0 : index
      %46 = vector.load %arg3[%c0_19, %c0_20, %c0_21] : memref<2x8x128xbf16, #tpu.memory_space<vmem>>, vector<2x8x128xbf16>
      %47 = arith.extf %46 : vector<2x8x128xbf16> to vector<2x8x128xf32>
      %cst_22 = arith.constant 2.500000e+01 : f32
      %48 = vector.broadcast %cst_22 : f32 to vector<2x8x128xf32>
      %49 = arith.mulf %47, %48 : vector<2x8x128xf32>
      %cst_23 = arith.constant dense<0xFF800000> : vector<2x8xf32>
      %50 = vector.multi_reduction <maximumf>, %49, %cst_23 [2] : vector<2x8x128xf32> to vector<2x8xf32>
      %51 = vector.shape_cast %50 : vector<2x8xf32> to vector<2x8x1xf32>
      %52 = vector.broadcast %51 : vector<2x8x1xf32> to vector<2x8x128xf32>
      %53 = arith.subf %49, %52 : vector<2x8x128xf32>
      %54 = math.exp %53 : vector<2x8x128xf32>
      %cst_24 = arith.constant dense<0.000000e+00> : vector<2x8xf32>
      %55 = vector.multi_reduction <add>, %54, %cst_24 [2] : vector<2x8x128xf32> to vector<2x8xf32>
      %56 = vector.shape_cast %55 : vector<2x8xf32> to vector<2x8x1xf32>
      %cst_25 = arith.constant 1.000000e+00 : f32
      %57 = vector.broadcast %cst_25 : f32 to vector<2x8x1xf32>
      %58 = arith.divf %57, %56 : vector<2x8x1xf32>
      %59 = vector.broadcast %58 : vector<2x8x1xf32> to vector<2x8x128xf32>
      %60 = arith.mulf %54, %59 : vector<2x8x128xf32>
      %61 = arith.truncf %60 : vector<2x8x128xf32> to vector<2x8x128xbf16>
      %c0_26 = arith.constant 0 : index
      %c0_27 = arith.constant 0 : index
      %c0_28 = arith.constant 0 : index
      %62 = vector.load %arg5[%c0_26, %c0_27, %c0_28] : memref<2x8x128xbf16, #tpu.memory_space<vmem>>, vector<2x8x128xbf16>
      tpu.vector_store %arg5[%c0_26, %c0_27, %c0_28], %61 {strides = array<i32>} : memref<2x8x128xbf16, #tpu.memory_space<vmem>>, vector<2x8x128xbf16>,
      %cst_29 = arith.constant 0.000000e+00 : f32
      %63 = vector.broadcast %cst_29 : f32 to vector<8x1xf32>
      %c0_30 = arith.constant 0 : index
      %c0_31 = arith.constant 0 : index
      %64 = vector.load %arg6[%c0_30, %c0_31] : memref<8x1xf32, #tpu.memory_space<vmem>>, vector<8x1xf32>
      tpu.vector_store %arg6[%c0_30, %c0_31], %63 {strides = array<i32>} : memref<8x1xf32, #tpu.memory_space<vmem>>, vector<8x1xf32>,
    } else {
    }
    %c0 = arith.constant 0 : index
    %c0_1 = arith.constant 0 : index
    %c0_2 = arith.constant 0 : index
    %3 = vector.load %arg2[%c0, %c0_1, %c0_2] : memref<1x8x128xbf16, #tpu.memory_space<vmem>>, vector<1x8x128xbf16>
    %4 = vector.shape_cast %3 : vector<1x8x128xbf16> to vector<8x128xbf16>
    %5 = arith.extf %4 : vector<8x128xbf16> to vector<8x128xf32>
    %cst = arith.constant 1.000000e+01 : f32
    %6 = vector.broadcast %cst : f32 to vector<8x128xf32>
    %7 = arith.mulf %5, %6 : vector<8x128xf32>
    %cst_3 = arith.constant dense<0xFF800000> : vector<8xf32>
    %8 = vector.multi_reduction <maximumf>, %7, %cst_3 [1] : vector<8x128xf32> to vector<8xf32>
    %9 = vector.shape_cast %8 : vector<8xf32> to vector<8x1xf32>
    %10 = vector.broadcast %9 : vector<8x1xf32> to vector<8x128xf32>
    %11 = arith.subf %7, %10 : vector<8x128xf32>
    %12 = math.exp %11 : vector<8x128xf32>
    %cst_4 = arith.constant dense<0.000000e+00> : vector<8xf32>
    %13 = vector.multi_reduction <add>, %12, %cst_4 [1] : vector<8x128xf32> to vector<8xf32>
    %14 = vector.shape_cast %13 : vector<8xf32> to vector<8x1xf32>
    %15 = math.log %14 : vector<8x1xf32>
    %c0_5 = arith.constant 0 : index
    %c0_6 = arith.constant 0 : index
    %c0_7 = arith.constant 0 : index
    %16 = vector.load %arg5[%c0_5, %c0_6, %c0_7] : memref<2x8x128xbf16, #tpu.memory_space<vmem>>, vector<2x8x128xbf16>
    %17 = arith.extf %16 : vector<2x8x128xbf16> to vector<2x8x128xf32>
    %18 = vector.shape_cast %11 : vector<8x128xf32> to vector<1x8x128xf32>
    %19 = vector.broadcast %18 : vector<1x8x128xf32> to vector<2x8x128xf32>
    %20 = arith.mulf %17, %19 : vector<2x8x128xf32>
    %cst_8 = arith.constant dense<0.000000e+00> : vector<2x8xf32>
    %21 = vector.multi_reduction <add>, %20, %cst_8 [2] : vector<2x8x128xf32> to vector<2x8xf32>
    %22 = vector.shape_cast %21 : vector<2x8xf32> to vector<2x8x1xf32>
    %c0_i32_9 = arith.constant 0 : i32
    %23 = arith.cmpi ne, %arg1, %c0_i32_9 : i32
    %cst_10 = arith.constant 1.000000e+00 : f32
    %cst_11 = arith.constant 0.000000e+00 : f32
    %24 = arith.select %23, %cst_10, %cst_11 : f32
    %c1_i32 = arith.constant 1 : i32
    %25 = arith.cmpi ne, %arg1, %c1_i32 : i32
    %cst_12 = arith.constant 1.000000e+00 : f32
    %cst_13 = arith.constant 0.000000e+00 : f32
    %26 = arith.select %25, %cst_12, %cst_13 : f32
    %c0_14 = arith.constant 0 : index
    %c0_15 = arith.constant 0 : index
    %27 = vector.load %arg6[%c0_14, %c0_15] : memref<8x1xf32, #tpu.memory_space<vmem>>, vector<8x1xf32>
    %28 = arith.addf %24, %26 : f32
    %29 = vector.broadcast %28 : f32 to vector<8x1xf32>
    %30 = arith.mulf %29, %15 : vector<8x1xf32>
    %31 = vector.extract_strided_slice %22 {offsets = [0, 0, 0], sizes = [1, 8, 1], strides = [1, 1, 1]} : vector<2x8x1xf32> to vector<1x8x1xf32>
    %32 = vector.shape_cast %31 : vector<1x8x1xf32> to vector<8x1xf32>
    %33 = vector.broadcast %24 : f32 to vector<8x1xf32>
    %34 = arith.mulf %33, %32 : vector<8x1xf32>
    %35 = vector.extract_strided_slice %22 {offsets = [1, 0, 0], sizes = [1, 8, 1], strides = [1, 1, 1]} : vector<2x8x1xf32> to vector<1x8x1xf32>
    %36 = vector.shape_cast %35 : vector<1x8x1xf32> to vector<8x1xf32>
    %37 = vector.broadcast %26 : f32 to vector<8x1xf32>
    %38 = arith.mulf %37, %36 : vector<8x1xf32>
    %39 = arith.addf %34, %38 : vector<8x1xf32>
    %40 = arith.subf %30, %39 : vector<8x1xf32>
    %41 = arith.addf %27, %40 : vector<8x1xf32>
    %c0_16 = arith.constant 0 : index
    %c0_17 = arith.constant 0 : index
    %42 = vector.load %arg6[%c0_16, %c0_17] : memref<8x1xf32, #tpu.memory_space<vmem>>, vector<8x1xf32>
    tpu.vector_store %arg6[%c0_16, %c0_17], %41 {strides = array<i32>} : memref<8x1xf32, #tpu.memory_space<vmem>>, vector<8x1xf32>,
    %c3_i32 = arith.constant 3 : i32
    %43 = arith.cmpi eq, %arg1, %c3_i32 : i32
    %44 = arith.extui %43 : i1 to i32
    %c0_i32_18 = arith.constant 0 : i32
    %45 = arith.cmpi ne, %44, %c0_i32_18 : i32
    scf.if %45 {
      %cst_19 = arith.constant 0.000000e+00 : f32
      %46 = vector.broadcast %cst_19 : f32 to vector<8x128xf32>
      %c0_20 = arith.constant 0 : index
      %c0_21 = arith.constant 0 : index
      %47 = vector.load %arg6[%c0_20, %c0_21] : memref<8x1xf32, #tpu.memory_space<vmem>>, vector<8x1xf32>
      %48 = vector.shape_cast %47 : vector<8x1xf32> to vector<1x8x1xf32>
      %cst_22 = arith.constant dense<0.000000e+00> : vector<1xf32>
      %49 = vector.multi_reduction <add>, %48, %cst_22 [1, 2] : vector<1x8x1xf32> to vector<1xf32>
      %50 = vector.shape_cast %49 : vector<1xf32> to vector<1x1x1xf32>
      %51 = vector.extract %50[0, 0, 0] : f32 from vector<1x1x1xf32>
      %cst_23 = arith.constant 0.010416667 : f32
      %52 = arith.mulf %51, %cst_23 : f32
      %53 = vector.broadcast %52 : f32 to vector<8x128xf32>
      %54 = arith.addf %46, %53 : vector<8x128xf32>
      %c0_24 = arith.constant 0 : index
      %c0_25 = arith.constant 0 : index
      %c0_26 = arith.constant 0 : index
      %55 = vector.load %arg4[%c0_24, %c0_25, %c0_26] : memref<1x8x128xf32, #tpu.memory_space<vmem>>, vector<1x8x128xf32>
      %56 = vector.shape_cast %55 : vector<1x8x128xf32> to vector<8x128xf32>
      %57 = vector.shape_cast %54 : vector<8x128xf32> to vector<1x8x128xf32>
      tpu.vector_store %arg4[%c0_24, %c0_25, %c0_26], %57 {strides = array<i32>} : memref<1x8x128xf32, #tpu.memory_space<vmem>>, vector<1x8x128xf32>,
    } else {
    }
    return
  }
  func.func @transform_0(%arg0: i32, %arg1: i32) -> (i32, i32, i32) {
    %c0_i32 = arith.constant 0 : i32
    %c0_i32_0 = arith.constant 0 : i32
    return %arg1, %arg0, %c0_i32 : i32, i32, i32
  }
  func.func @transform_1(%arg0: i32, %arg1: i32) -> (i32, i32, i32) {
    %c0_i32 = arith.constant 0 : i32
    %c0_i32_0 = arith.constant 0 : i32
    %c0_i32_1 = arith.constant 0 : i32
    return %c0_i32, %arg0, %c0_i32_0 : i32, i32, i32
  }
  func.func @transform_2(%arg0: i32, %arg1: i32) -> (i32, i32, i32) {
    %c0_i32 = arith.constant 0 : i32
    %c0_i32_0 = arith.constant 0 : i32
    %c0_i32_1 = arith.constant 0 : i32
    return %arg0, %c0_i32, %c0_i32_0 : i32, i32, i32
  }
}

</mosaic_0001>

<bundles_post_ra>
// kernel: tpu_custom_call.1
= control target key start
LH: loop header
LB: loop body
LE: loop exit
PB: predicated region body
PF: predicated region fallthrough
CT: control target
= control target key end

     0   :  { %s1041_s0 = inlined_call_operand.hbm [shape: bf16[4,16,128], index: 0, kind: input, shape index: {}]   ;;  %s1042_s1 = inlined_call_operand.hbm [shape: bf16[2,16,128], index: 1, kind: input, shape index: {}]   ;;  %s1043_s2 = inlined_call_operand.hbm [shape: f32[2,8,128], index: 2, kind: output, shape index: {}]  }
   0x1   :  { %1049 = sst [smem:[#allocation17_spill]] %s1042_s1 }
   0x2   :  { %1050 = sst [smem:[#allocation18_spill]] %s1043_s2 }
   0x3   :  { %7 = vsyncpa [#allocation5], 0 }
   0x4   :  { %9 = vsyncpa [#allocation5 + $0x1], 0 }
   0x5   :  { %10 = vsyncpa [#allocation8], 0 }
   0x6   :  { %11 = vsyncpa [#allocation6], 0 }
   0x7   :  { %13 = vsyncpa [#allocation6 + $0x1], 0  ;;  %s797_s9 = smov 0   ;;  %s799_s10 = smov 0  }
   0x8   :  { %s801_s11 = smov 0   ;;  %s803_s12 = smov 0  }
   0x9   :  { %s805_s13 = smov 0   ;;  %s807_s14 = smov 0  }
   0xa   :  { %s809_s15 = smov 0   ;;  %s811_s16 = smov 0  }
   0xb   :  { %s813_s17 = smov 0   ;;  %s815_s18 = smov 0  }
   0xc   :  { %s817_s19 = smov 0  }
   0xd LB: > { %1051 = sst [smem:[#allocation13_spill]] %s735_s9  ;;  %s432_s20 = sadd.s32 4294967295, %s775_s19   ;;  %s775_s19 = sphi %s817_s19, %s19_s19   ;;  %s771_s18 = sphi %s815_s18, %s1079_s18   ;;  %s767_s17 = sphi %s813_s17, %s1078_s17   ;;  %s763_s16 = sphi %s811_s16, %s1077_s16   ;;  %s759_s15 = sphi %s809_s15, %s1076_s15   ;;  %s755_s14 = sphi %s807_s14, %s1075_s14   ;;  %s751_s13 = sphi %s805_s13, %s1074_s13   ;;  %s747_s12 = sphi %s803_s12, %s1073_s12   ;;  %s743_s11 = sphi %s801_s11, %s1072_s11   ;;  %s739_s10 = sphi %s799_s10, %s1071_s10   ;;  %s735_s9 = sphi %s797_s9, %s1070_s9  }
   0xe   : > { %s433_s21 = sadd.s32 4294967294, %s775_s19   ;;  %p854_p0 = scmp.eq.s32.totalorder %s432_s20, 0 }
   0xf   : > { %p79_p1 = scmp.ne.s32.totalorder %s739_s10, %s735_s9  ;;  %p860_p2 = scmp.eq.s32.totalorder %s432_s20, 7 }
  0x10   : > { %p109_p3 = scmp.eq.s32.totalorder %s433_s21, 7  ;;  %p434_p5 = scmp.ge.s32.totalorder %s775_s19, 1 }
  0x11   : > { %p866_p4 = por %p79_p1, %p854_p0  ;;  %p116_p7 = scmp.lt.s32.totalorder %s775_s19, 9 }
  0x12   : > { %p871_p6 = por %p109_p3, %p79_p1  ;;  %s435_s26 = sshll.u32 %s763_s16, 2 }
  0x13   : > { %p877_p8 = pnand %p434_p5, %p116_p7  ;;  %s1058_s1 = sld [smem:[#allocation17_spill]] }
  0x14   : > { %s1055_s25 = scalar_select %p871_p6, 1, 0 }
  0x15   : > { %s777_s4 = smov [#allocation7]   ;;  %p470_p9 = pneg %p877_p8 }
  0x16   : > { %1056 = sst [smem:[#allocation14_spill]] %s1055_s25  ;;  %s131_s5 = sshll.u32 %s777_s4, 4  ;;  %s132_s5 = int_to_ptr.vmem [resolvable:$true] %s131_s5 }
  0x17   : > { %p888_p10 = pnand %p470_p9, %p866_p4 }
  0x19   : > { %s128_s30 = scalar_lea.hbm %s1058_s1, %s435_s26  ;;  %p593_p12 = pneg %p888_p10 }
  0x1a   : > { %s129_s3 = sshll.u32 %s128_s30, 4  ;;  %s596_s26 = scalar_lea.hbm %s1058_s1, 16  ;;  %s130_s3 = int_to_ptr.hbm [resolvable:$true] %s129_s3 }
  0x1b   : > { %s589_s7 = sshra.s32 %s130_s3, 4  ;;  %s590_s7 = int_to_ptr.hbm [resolvable:$true] %s589_s7 }
  0x1c   : > { %s591_s8 = scalar_lea.hbm %s590_s7, 8  ;;  %p597_p3 = scmp.lt.s32.totalorder %s590_s7, %s1058_s1 }
  0x1d   : > { %p592_p11 = scmp.ne.s32.totalorder %s590_s7, %s591_s8  ;;  %p598_p5 = scmp.lt.s32.totalorder %s596_s26, %s591_s8 }
  0x1f   : > { %p594_p13 = pnand %p593_p12, %p592_p11  ;;  %p599_p7 = por %p598_p5, %p597_p3 }
  0x21   : > { %p595_p1 = pneg %p594_p13 }
  0x23   : > { %p600_p9 = pnand %p599_p7, %p595_p1 }
  0x25   : > { %603 = shalt.err (!%p600_p9)
}
  0x26   : > { %s778_s30 = smov 128   ;;  %s779_s4 = smov 64  }
  0x27   : > { %s780_s20 = smov 4   ;;  %s28_s7 = sadd.s32 1, %s767_s17 }
  0x28   : > { %473 = dma.hbm_to_vmem [thread:$0]  (!%p888_p10), %s130_s3, 128, %s132_s5, [#allocation8], %s778_s30, %s779_s4, %s780_s20  }
  0x29   : > { %p29_p11 = scmp.ge.s32.totalorder %s28_s7, 4  ;;  %s31_s8 = sadd.s32 1, %s771_s18 }
  0x2a   : > { %s40_s21 = sadd.s32 1, %s755_s14  ;;  %p47_p12 = scmp.ne.s32.totalorder %s755_s14, %s751_s13 }
  0x2b   : > { %s1081_s7 = smov (%p29_p11, %s28_s7), 0  ;;  %s1083_s8 = smov (!%p29_p11, %s31_s8), %s771_s18 }
  0x2c   : > { %1060 = sst [smem:[#allocation15_spill]] %s1081_s7  ;;  %s35_s26 = ssub.s32 %s767_s17, %s1081_s7 }
  0x2d   : > { %p48_p13 = scmp.eq.s32.totalorder %s775_s19, 0  ;;  %p33_p10 = scmp.ge.s32.totalorder %s1083_s8, 2 }
  0x2e   : > { %p53_p1 = scmp.ne.s32.totalorder %s751_s13, %s747_s12  ;;  %s66_s5 = sadd.s32 1, %s743_s11 }
  0x2f   : > { %p915_p3 = por %p48_p13, %p47_p12  ;;  %s1085_s8 = smov (%p33_p10, %s1083_s8), 0 }
  0x30   : > { %1062 = sst [smem:[#allocation16_spill]] %s1085_s8  ;;  %p924_p5 = por %p854_p0, %p53_p1 }
  0x31   : > { %p102_p7 = scmp.ne.s32.totalorder %s743_s11, %s739_s10  ;;  %s36_s28 = ssub.s32 %s771_s18, %s1085_s8 }
  0x32   : > { %p482_p9 = scmp.lt.s32.totalorder %s775_s19, 8  ;;  %s37_s29 = sor.u32 %s36_s28, %s35_s26 }
  0x33   : > { %p64_p11 = scmp.eq.s32.totalorder %s36_s28, 0  ;;  %p38_p12 = scmp.eq.s32.totalorder %s37_s29, 0 }
  0x34   : > { %p935_p13 = por %p860_p2, %p102_p7  ;;  %s145_s4 = sand.u32 1, %s755_s14  }
  0x35   : > { %s940_s30 = scalar_select %p64_p11, %s743_s11, %s66_s5  }
  0x36   : > { %s943_s22 = scalar_select %p38_p12, %s755_s14, %s40_s21  }
  0x37   : > { %s438_s20 = sshll.u32 %s767_s17, 1  ;;  %s437_s1 = sshll.u32 %s145_s4, 2 }
  0x38   : > { %s153_s7 = sadd.s32 %s771_s18, %s438_s20  ;;  %s149_s25 = scalar_lea.vmem [#allocation4], %s437_s1 }
  0x39   : > { %s439_s8 = sshll.u32 %s153_s7, 2  ;;  %s159_s26 = sshll.u32 %s149_s25, 4  ;;  %s160_s26 = int_to_ptr.vmem [resolvable:$true] %s159_s26 }
  0x3a   : > { %s155_s28 = scalar_lea.hbm %s1041_s0, %s439_s8  ;;  %p475_p0 = pnand %p482_p9, %p915_p3 }
  0x3b   : > { %s157_s23 = sshll.u32 %s155_s28, 4  ;;  %s146_s5 = scalar_lea.sflag [#allocation5], %s145_s4  ;;  %s158_s23 = int_to_ptr.hbm [resolvable:$true] %s157_s23 }
  0x3c   : > { %477 = dma.hbm_to_vmem [thread:$0]  (!%p475_p0), %s158_s23, 64, %s160_s26, %s146_s5  }
  0x3d   : > { %168 = sbr.rel (%p877_p8) target bundleno = 828 (0x33c), region = 28  ;;  %s170_s7 = sand.u32 (!%p877_p8), 1, %s751_s13  }
  0x3e   : > { %s958_s1 = sshll.u32 (!%p877_p8), %s170_s7, 2  ;;  %s171_s25 = scalar_lea.sflag (!%p877_p8), [#allocation5], %s170_s7 }
  0x3f   : > { %s174_s2 = scalar_lea.vmem (!%p877_p8), [#allocation4], %s958_s1 }
  0x42   : > { %722 = dma.done.wait (%p924_p5), %s171_s25, 64  }
  0x43   : > { %724 = vsyncadd (%p924_p5), %s171_s25, 4294967232 }
  0x44   : > { %726 = dma.done.wait (%p866_p4), [#allocation8], 128  }
  0x45   : > { %728 = vsyncadd (%p866_p4), [#allocation8], 4294967168  ;;  %s198_s9 = sand.u32 1, %s739_s10   ;;  %p443_p2 = scmp.ne.s32.totalorder %s759_s15, 0 }
  0x46   : > { %s972_s27 = sshll.u32 %s198_s9, 3 }
  0x47   : > { %s200_s8 = scalar_lea.vmem [#allocation9], %s972_s27  ;;  %204 = sbr.rel (%p443_p2) target bundleno = 354 (0x162), region = 40 }
  0x4c   : > { %v450_v0 = vld [vmem:[#allocation7] sm:$0xff]   ;;  %vm261_vm0 = vcmask 7168   ;;  %v781_v13 = vmov 0.0  }
  0x4d   : > { %v451_v1 = vunpack.c.l.bf16 %v450_v0  ;;  %v452_v3 = vunpack.c.h.bf16 %v450_v0  ;;  %262 = vst.msk [vmem:[#allocation3] sm:$0xff] %vm261_vm0, %v781_v13 }
  0x4f   : > { %v209_v2 = vmul.f32 25.0, %v451_v1  ;;  %v210_v4 = vmul.f32 25.0, %v452_v3 }
  0x51   : > { %211 = vmax.xlane.f32.xlu0 %v209_v2 }
  0x59   : > { %213 = vmax.xlane.f32.xlu0 %v210_v4 }
  0xc4   : > { %v212_v5 = vpop.xlane.xlu0 %211 }
  0xc5   : > { %v215_v6 = vsub.f32 %v209_v2, %v212_v5 }
  0xc7   : > { %v217_v7 = vmul.f32 1.442695, %v215_v6 }
  0xc9   : > { %577 = vpow2.f32 %v217_v7 }
  0xcc   : > { %v214_v8 = vpop.xlane.xlu0 %213 }
  0xcd   : > { %v216_v9 = vsub.f32 %v210_v4, %v214_v8 }
  0xcf   : > { %v578_v10 = vpop.eup %577  ;;  %v219_v11 = vmul.f32 1.442695, %v216_v9 }
  0xd0   : > { %221 = vadd.xlane.f32.xlu1 %v578_v10 }
  0xd1   : > { %579 = vpow2.f32 %v219_v11 }
  0xd7   : > { %v580_v12 = vpop.eup %579 }
  0xd8   : > { %223 = vadd.xlane.f32.xlu1 %v580_v12 }
 0x143   : > { %v222_v14 = vpop.xlane.xlu1 %221 }
 0x144   : > { %581 = vrcp.f32 %v222_v14  ;;  %v236_v23 = vand.u32 2147483648, %v222_v14  ;;  %vm230_vm2 = vweird.f32 %v222_v14  ;;  %v234_v24 = vand.u32 2147483647, %v222_v14 }
 0x146   : > { %v237_v30 = vor.u32 1.1754944e-38, %v236_v23  ;;  %vm235_vm5 = vcmp.eq.f32.partialorder %v234_v24, 8.507059e+37 }
 0x14a   : > { %v582_v15 = vpop.eup %581 }
 0x14b   : > { %v226_v16 = vmul.f32 %v582_v15, %v222_v14  ;;  %v224_v17 = vpop.xlane.xlu1 %223  ;;  %vm231_vm1 = vweird.f32 %v582_v15 }
 0x14c   : > { %583 = vrcp.f32 %v224_v17  ;;  %vm232_vm3 = vmor %vm230_vm2, %vm231_vm1  ;;  %v251_v26 = vand.u32 2147483648, %v224_v17  ;;  %v249_v29 = vand.u32 2147483647, %v224_v17  ;;  %vm245_vm6 = vweird.f32 %v224_v17 }
 0x14d   : > { %v227_v18 = vsub.f32 1.0, %v226_v16 }
 0x14e   : > { %v252_v33 = vor.u32 1.1754944e-38, %v251_v26  ;;  %vm250_vm8 = vcmp.eq.f32.partialorder %v249_v29, 8.507059e+37 }
 0x14f   : > { %v228_v19 = vmul.f32 %v582_v15, %v227_v18 }
 0x151   : > { %v229_v21 = vadd.f32 %v582_v15, %v228_v19 }
 0x152   : > { %v584_v20 = vpop.eup %583 }
 0x153   : > { %v241_v22 = vmul.f32 %v584_v20, %v224_v17  ;;  %v233_v27 = vsel %vm232_vm3, %v582_v15, %v229_v21  ;;  %vm246_vm4 = vweird.f32 %v584_v20 }
 0x154   : > { %v238_v32 = vsel %vm235_vm5, %v237_v30, %v233_v27  ;;  %vm247_vm7 = vmor %vm245_vm6, %vm246_vm4 }
 0x155   : > { %v242_v25 = vsub.f32 1.0, %v241_v22  ;;  %v255_v36 = vmul.f32 %v578_v10, %v238_v32 }
 0x157   : > { %v243_v28 = vmul.f32 %v584_v20, %v242_v25 }
 0x159   : > { %v244_v31 = vadd.f32 %v584_v20, %v243_v28 }
 0x15b   : > { %v248_v34 = vsel %vm247_vm7, %v584_v20, %v244_v31 }
 0x15c   : > { %v253_v35 = vsel %vm250_vm8, %v252_v33, %v248_v34 }
 0x15d   : > { %v256_v37 = vmul.f32 %v580_v12, %v253_v35 }
 0x15f   : > { %v456_v38 = vpack.c.bf16 %v256_v37, %v255_v36 }
 0x161   : > { %457 = vst [vmem:[#allocation2] sm:$0xff] %v456_v38  }
 0x162 PF: > { %v263_v39 = vld [vmem:[%s174_s2] sm:$0xf]  ;;  %p287_p4 = scmp.ne.s32.totalorder %s759_s15, 1  ;;  %v289_v63 = vld [vmem:[#allocation3] sm:$0xff]  ;;  %vm300_vm9 = vcmask 7168   ;;  %p444_p8 = scmp.ne.s32.totalorder %s759_s15, 3 }
 0x163   : > { %v264_v40 = vunpack.c.l.bf16 %v263_v39  ;;  %s286_s21 = scalar_select %p443_p2, 1.0, 0.0 }
 0x164   : > { %s288_s24 = scalar_select %p287_p4, 1.0, 0.0 }
 0x165   : > { %v265_v41 = vmul.f32 10.0, %v264_v40  ;;  %v293_v55 = vstv %s286_s21 }
 0x166   : > { %s290_s3 = sadd.f32 %s288_s24, %s286_s21  ;;  %v295_v53 = vstv %s288_s24 }
 0x167   : > { %266 = vmax.xlane.f32.xlu0 %v265_v41 }
 0x168   : > { %v459_v42 = vld [vmem:[#allocation2] sm:$0xff]   ;;  %v291_v58 = vstv %s290_s3 }
 0x169   : > { %v460_v43 = vunpack.c.l.bf16 %v459_v42  ;;  %v461_v48 = vunpack.c.h.bf16 %v459_v42 }
 0x1da   : > { %v267_v44 = vpop.xlane.xlu0 %266 }
 0x1db   : > { %v268_v45 = vsub.f32 %v265_v41, %v267_v44 }
 0x1dd   : > { %v269_v46 = vmul.f32 1.442695, %v268_v45  ;;  %v279_v47 = vmul.f32 %v460_v43, %v268_v45  ;;  %v280_v50 = vmul.f32 %v461_v48, %v268_v45 }
 0x1df   : > { %585 = vpow2.f32 %v269_v46  ;;  %281 = vadd.xlane.f32.xlu1 %v279_v47 }
 0x1e5   : > { %v586_v49 = vpop.eup %585 }
 0x1e6   : > { %271 = vadd.xlane.f32.xlu0 %v586_v49 }
 0x1e7   : > { %283 = vadd.xlane.f32.xlu1 %v280_v50 }
 0x252   : > { %v282_v51 = vpop.xlane.xlu1 %281 }
 0x253   : > { %v294_v59 = vmul.f32 %v293_v55, %v282_v51 }
 0x259   : > { %v272_v52 = vpop.xlane.xlu0 %271 }
 0x25a   : > { %587 = vlog2.f32 %v272_v52  ;;  %v284_v54 = vpop.xlane.xlu1 %283 }
 0x25b   : > { %v296_v56 = vmul.f32 %v295_v53, %v284_v54 }
 0x25d   : > { %v297_v62 = vadd.f32 %v296_v56, %v294_v59 }
 0x260   : > { %v588_v57 = vpop.eup %587 }
 0x261   : > { %v274_v60 = vmul.f32 0.6931472, %v588_v57 }
 0x263   : > { %v292_v61 = vmul.f32 %v291_v58, %v274_v60 }
 0x265   : > { %v298_v0 = vsub.f32 %v292_v61, %v297_v62  ;;  %305 = sbr.rel (%p444_p8) target bundleno = 808 (0x328), region = 44 }
 0x267   : > { %v299_v1 = vadd.f32 %v298_v0, %v289_v63 }
 0x269   : > { %301 = vst.msk [vmem:[#allocation3] sm:$0xff] %vm300_vm9, %v299_v1 }
 0x270   : > { %v306_v2 = vld [vmem:[#allocation3] sm:$0xff] }
 0x271   : > { %v307_v3 = vsel %vm300_vm9, %v306_v2, 0.0 }
 0x272   : > { %308 = vadd.xlane.f32.xlu0 %v307_v3 }
 0x2e5   : > { %v309_v4 = vpop.xlane.xlu0 %308 }
 0x2e6   : > { %v310_v5 = vrot.slane %v309_v4, 4 }
 0x2e8   : > { %v311_v6 = vadd.f32 %v310_v5, %v309_v4 }
 0x2ea   : > { %v312_v7 = vrot.slane %v311_v6, 2 }
 0x2ec   : > { %v313_v8 = vadd.f32 %v312_v7, %v311_v6 }
 0x2ee   : > { %v314_v9 = vrot.slane %v313_v8, 1 }
 0x2f0   : > { %v315_v10 = vadd.f32 %v314_v9, %v313_v8 }
 0x2f2   : > { %462 = vpush %v315_v10 }
 0x323   : > { %s463_s6 = spop %462 }
 0x324   : > { %s317_s29 = smul.f32 0.010416667, %s463_s6 }
 0x326   : > { %v318_v11 = vstv %s317_s29 }
 0x327   : > { %320 = vst [vmem:[%s200_s8] sm:$0xff] %v318_v11 }
 0x328 PF: > { %s446_s15 = sshll.u32 %s763_s16, 3  ;;  %s1065_s26 = sld [smem:[#allocation18_spill]] }
 0x329   : > { %s334_s23 = sshll.u32 %s200_s8, 4  ;;  %s322_s7 = scalar_lea.sflag [#allocation6], %s198_s9  ;;  %s335_s23 = int_to_ptr.vmem [resolvable:$true] %s334_s23 }
 0x32e   : > { %s332_s28 = scalar_lea.hbm %s1065_s26, %s446_s15  ;;  %s669_s24 = scalar_lea.hbm %s1065_s26, 16 }
 0x32f   : > { %s336_s5 = sshll.u32 %s332_s28, 4  ;;  %s337_s5 = int_to_ptr.hbm [resolvable:$true] %s336_s5 }
 0x330   : > { %s663_s1 = sshra.s32 %s337_s5, 4  ;;  %s664_s1 = int_to_ptr.hbm [resolvable:$true] %s663_s1 }
 0x331   : > { %s665_s25 = scalar_lea.hbm %s664_s1, 8  ;;  %p670_p5 = scmp.lt.s32.totalorder %s664_s1, %s1065_s26 }
 0x332   : > { %p666_p10 = scmp.ne.s32.totalorder %s664_s1, %s665_s25  ;;  %p671_p7 = scmp.lt.s32.totalorder %s669_s24, %s665_s25 }
 0x334   : > { %p667_p1 = pnand %p666_p10, %p935_p13  ;;  %p672_p9 = por %p671_p7, %p670_p5 }
 0x336   : > { %p668_p3 = pneg %p667_p1 }
 0x338   : > { %p673_p11 = pnand %p672_p9, %p668_p3 }
 0x33a   : > { %676 = shalt.err (!%p673_p11)
}
 0x33b   : > { %468 = dma.vmem_to_hbm [thread:$0]  (%p935_p13), %s335_s23, 128, %s337_s5, %s322_s7  }
 0x33c PF: > { %s1066_s9 = sld [smem:[#allocation13_spill]]  ;;  %p483_p12 = scmp.ge.s32.totalorder %s775_s19, 2 }
 0x33e   : > { %p479_p0 = pnand %p483_p12, %p871_p6 }
 0x340   : > { %p480_p2 = pneg %p479_p0 }
 0x342   : > { %s348_s8 = sand.u32 1, %s1066_s9  }
 0x343   : > { %s349_s6 = scalar_lea.sflag [#allocation6], %s348_s8 }
 0x344   : > { %730 = dma.done.wait (%p480_p2), %s349_s6, 128  }
 0x345   : > { %732 = vsyncadd (%p480_p2), %s349_s6, 4294967168  ;;  %s19_s19 = sadd.s32 1, %s775_s19   ;;  %s1068_s29 = sld [smem:[#allocation15_spill]] }
 0x346   : > { %p16_p4 = scmp.ge.s32.totalorder %s19_s19, 10   ;;  %s1069_s4 = sld [smem:[#allocation16_spill]] }
 0x347   : > { %s1070_s9 = smov %s739_s10  ;;  %s1071_s10 = smov %s743_s11 }
 0x348   : > { %s1072_s11 = smov %s940_s30  ;;  %s1073_s12 = smov %s751_s13 }
 0x349   : > { %s1074_s13 = smov %s755_s14  ;;  %s1075_s14 = smov %s943_s22 }
 0x34a   : > { %s1076_s15 = smov %s767_s17  ;;  %s1077_s16 = smov %s771_s18 }
 0x34b   : > { %s1078_s17 = smov %s1068_s29  ;;  %18 = sbr.rel (!%p16_p4) target bundleno = 13 (0xd), region = 86 }
 0x34c   : > { %s1079_s18 = smov %s1069_s4 }
 0x350   :  { %355 = vsyncpa [#allocation5], 1 }
 0x351   :  { %357 = vsyncpa [#allocation5 + $0x1], 1 }
 0x352   :  { %358 = vsyncpa [#allocation8], 1 }
 0x353   :  { %359 = vsyncpa [#allocation6], 1 }
 0x354   :  { %361 = vsyncpa [#allocation6 + $0x1], 1 }

</bundles_post_ra>
